<compile_context>
chip_gen: v7x
topology: tpu7x:2x2x1
jax: 0.10.0
libtpu: 0.0.40
codegen_flags: <defaults>
</compile_context>

<pallas_src>
import functools

import jax
import jax.numpy as jnp
from jax import lax
from jax.experimental import pallas as pl
from jax.experimental.pallas import tpu as pltpu


def _round_up(v, m):
    return ((v + m - 1) // m) * m


# Minimum sublane count per itemsize (native tile second-to-last dim).
_SUBLANE_MIN = {4: 8, 2: 16, 1: 32}


def _mask_two_matmul_kernel(x_ref, c_ref, cm_ref, o_ref, *, matmul_dtype):
    # x_ref: (TM, D) io dtype; c_ref/cm_ref: (B, D) matmul dtype.
    xm = x_ref[...].astype(matmul_dtype)
    # contribs[m, b] = sum_d x[m, d] * C[b, d]  (contract shared D axis,
    # no transpose; f32 MXU accumulation).
    contribs = lax.dot_general(
        xm, c_ref[...],
        dimension_numbers=(((1,), (1,)), ((), ())),
        preferred_element_type=jnp.float32,
    )  # (TM, B)
    # recon[m, d] = sum_b contribs[m, b] * Cm[b, d]
    recon = lax.dot_general(
        contribs.astype(matmul_dtype), cm_ref[...],
        dimension_numbers=(((1,), (0,)), ((), ())),
        preferred_element_type=jnp.float32,
    )  # (TM, D)
    # Fresh x read keeps the f32 copy's live range out of the matmuls.
    o_ref[...] = (x_ref[...].astype(jnp.float32) - recon).astype(o_ref.dtype)


def _mask_projection_kernel(x_ref, p_ref, o_ref, *, matmul_dtype):
    # x_ref: (TM, D); p_ref: (D, D) with P = C^T @ (clamp(mask)[:, None] * C).
    xm = x_ref[...].astype(matmul_dtype)
    recon = lax.dot_general(
        xm, p_ref[...],
        dimension_numbers=(((1,), (0,)), ((), ())),
        preferred_element_type=jnp.float32,
    )  # (TM, D)
    o_ref[...] = (x_ref[...].astype(jnp.float32) - recon).astype(o_ref.dtype)


def _pick_tm(M, d, nb_base, x_itemsize, mm_itemsize, use_projection,
             tm_max, vmem_budget_bytes):
    """Largest row-tile that fits the VMEM budget, >= 2 grid steps if possible."""
    sub = _SUBLANE_MIN.get(x_itemsize, 8)
    d_lane = _round_up(d, 128)                           # lane-padded width
    b_sub = _round_up(nb_base, _SUBLANE_MIN.get(mm_itemsize, 8))
    b_lane = _round_up(nb_base, 128)

    def vmem_estimate(tm):
        io = 4 * tm * d_lane * x_itemsize                # x in + out, 2 bufs each
        if use_projection:
            resident = 2 * d_lane * d_lane * mm_itemsize          # P (2 bufs)
            tmp = tm * (d_lane * mm_itemsize + 4 * d_lane)        # xm + recon
        else:
            resident = 2 * 2 * b_sub * d_lane * mm_itemsize       # C, Cm (2 bufs)
            tmp = tm * (d_lane * mm_itemsize + 4 * b_lane + 4 * d_lane)
        return io + resident + tmp

    tm = _round_up(min(tm_max, _round_up(M, sub)), sub)
    while tm > sub and vmem_estimate(tm) > vmem_budget_bytes:
        tm -= sub
    tm = max(tm, sub)
    # Guarantee >= 2 grid steps so both v7x TensorCores get work.
    if M >= 2 * sub:
        tm = min(tm, _round_up(pl.cdiv(M, 2), sub))
    return tm


def mask_forward(x, centroids, mask, nb_base, *,
                 matmul_dtype=jnp.bfloat16,
                 tm_max=1024,
                 vmem_budget_bytes=24 * 1024 * 1024,
                 vmem_limit_bytes=40 * 1024 * 1024):
    """x: (c, s, d); centroids: (>=nb_base, d); mask: (>=nb_base,)."""
    c, s, d = x.shape
    M = c * s
    x2 = x.reshape(M, d)                       # metadata-only, no HBM copy

    C = centroids[:nb_base].astype(jnp.float32)
    m = jnp.clip(mask[:nb_base].astype(jnp.float32), 0.0, 1.0)
    Cm = m[:, None] * C                        # clamp(mask) folded in

    x_itemsize = jnp.dtype(x.dtype).itemsize
    mm_itemsize = jnp.dtype(matmul_dtype).itemsize
    d_lane = _round_up(d, 128)

    # Single (D, D) projection matmul when it has fewer FLOPs than the
    # two-matmul path (nb_base >= D/2) and P comfortably fits v7x VMEM.
    use_projection = (2 * nb_base >= d) and (d_lane <= 2048)

    tm = _pick_tm(M, d, nb_base, x_itemsize, mm_itemsize, use_projection,
                  tm_max, vmem_budget_bytes)
    grid = (pl.cdiv(M, tm),)                   # ragged last block; M unpadded

    x_spec = pl.BlockSpec((tm, d), lambda i: (i, 0))       # last dim = full d
    out_spec = pl.BlockSpec((tm, d), lambda i: (i, 0))
    compiler_params = pltpu.CompilerParams(
        dimension_semantics=("parallel",),     # megacore sharding on v7x
        vmem_limit_bytes=vmem_limit_bytes,
    )

    if use_projection:
        # P = C^T @ Cm, computed once in f32 (HIGHEST precision; tiny matmul),
        # then cast to the MXU dtype.  Identity is NOT folded in: the residual
        # subtraction stays explicit in f32 inside the kernel.
        P = jnp.einsum("bi,bj->ij", C, Cm,
                       precision=lax.Precision.HIGHEST).astype(matmul_dtype)
        kernel = functools.partial(_mask_projection_kernel,
                                   matmul_dtype=matmul_dtype)
        cost = pl.CostEstimate(
            flops=2 * M * d * d,
            bytes_accessed=2 * M * d * x_itemsize + d * d * mm_itemsize,
            transcendentals=0,
        )
        operands = (x2, P)
        # P's index_map is constant across the grid, so Pallas fetches it
        # once; we stay on the default pipeline path (no pl.Buffered(1)).
        in_specs = [x_spec, pl.BlockSpec((d, d), lambda i: (0, 0))]
    else:
        Cp = C.astype(matmul_dtype)
        Cmp = Cm.astype(matmul_dtype)
        kernel = functools.partial(_mask_two_matmul_kernel,
                                   matmul_dtype=matmul_dtype)
        cost = pl.CostEstimate(
            flops=4 * M * nb_base * d,
            bytes_accessed=2 * M * d * x_itemsize
                           + 2 * nb_base * d * mm_itemsize,
            transcendentals=0,
        )
        operands = (x2, Cp, Cmp)
        in_specs = [x_spec,
                    pl.BlockSpec((nb_base, d), lambda i: (0, 0)),
                    pl.BlockSpec((nb_base, d), lambda i: (0, 0))]

    out2 = pl.pallas_call(
        kernel,
        out_shape=jax.ShapeDtypeStruct((M, d), x.dtype),
        grid=grid,
        in_specs=in_specs,
        out_specs=out_spec,
        compiler_params=compiler_params,
        cost_estimate=cost,
    )(*operands)

    return out2.reshape(c, s, d)


def mask_reference(x, centroids, mask, nb_base):
    C = centroids[:nb_base]
    contribs = jnp.einsum("csd,bd->csb", x, C)
    removed = jnp.clip(mask[:nb_base], 0.0, 1.0)[None, None, :] * contribs
    return x - jnp.einsum("csb,bd->csd", removed, C)


if __name__ == "__main__":
    key = jax.random.PRNGKey(0)
    kx, kc = jax.random.split(key)

    c, s, d = 2, 16, 32
    x = jax.random.normal(kx, (c, s, d), dtype=jnp.float32)

    # ---- Case 1: nb_base < d/2  ->  two-matmul kernel path ---------------
    nb_base = 8
    centroids = jax.random.normal(kc, (nb_base, d), dtype=jnp.float32)
    mask = jnp.ones((nb_base,), dtype=jnp.float32) * 0.1   # Parameter init
    ref = mask_reference(x, centroids, mask, nb_base)

    out_f32 = mask_forward(x, centroids, mask, nb_base,
                           matmul_dtype=jnp.float32)
    jax.block_until_ready(out_f32)
    assert out_f32.shape == (c, s, d)
    assert jnp.allclose(out_f32, ref, atol=1e-4, rtol=1e-4)

    out_bf16 = mask_forward(x, centroids, mask, nb_base)   # default bf16 MXU
    jax.block_until_ready(out_bf16)
    assert out_bf16.shape == (c, s, d)
    assert jnp.allclose(out_bf16, ref, atol=1e-1, rtol=1e-1)

    # ---- Case 2: nb_base >= d/2 -> precomputed (D, D) projection path ----
    nb_base2 = 24
    centroids2 = jax.random.normal(kc, (nb_base2, d), dtype=jnp.float32)
    mask2 = jnp.ones((nb_base2,), dtype=jnp.float32) * 0.1
    ref2 = mask_reference(x, centroids2, mask2, nb_base2)

    out2_f32 = mask_forward(x, centroids2, mask2, nb_base2,
                            matmul_dtype=jnp.float32)
    jax.block_until_ready(out2_f32)
    assert jnp.allclose(out2_f32, ref2, atol=1e-4, rtol=1e-4)

    out2_bf16 = mask_forward(x, centroids2, mask2, nb_base2)
    jax.block_until_ready(out2_bf16)
    assert jnp.allclose(out2_bf16, ref2, atol=1e-1, rtol=1e-1)

    print("KERNEL_OK")
</pallas_src>

<mosaic_0001>
module attributes {stable_mosaic.version = 11 : i64} {
  func.func @_mask_two_matmul_kernel(%arg0: i32, %arg1: memref<16x32xf32, #tpu.memory_space<vmem>>, %arg2: memref<8x32xf32, #tpu.memory_space<vmem>>, %arg3: memref<8x32xf32, #tpu.memory_space<vmem>>, %arg4: memref<16x32xf32, #tpu.memory_space<vmem>>) attributes {dimension_semantics = [#tpu.dimension_semantics<parallel>], iteration_bounds = array<i64: 2>, scalar_prefetch = 0 : i64, scratch_operands = 0 : i64, tpu.core_type = #tpu.core_type<tc>, window_params = [{transform_indices = @transform_0, window_bounds = array<i64: 16, 32>}, {pipeline_mode = #tpu.pipeline_mode<synchronous>, transform_indices = @transform_1, window_bounds = array<i64: 8, 32>}, {pipeline_mode = #tpu.pipeline_mode<synchronous>, transform_indices = @transform_2, window_bounds = array<i64: 8, 32>}, {transform_indices = @transform_3, window_bounds = array<i64: 16, 32>}]} {
    %c0 = arith.constant 0 : index
    %c0_0 = arith.constant 0 : index
    %0 = vector.load %arg1[%c0, %c0_0] : memref<16x32xf32, #tpu.memory_space<vmem>>, vector<16x32xf32>
    %c0_1 = arith.constant 0 : index
    %c0_2 = arith.constant 0 : index
    %1 = vector.load %arg2[%c0_1, %c0_2] : memref<8x32xf32, #tpu.memory_space<vmem>>, vector<8x32xf32>
    %cst = arith.constant dense<0.000000e+00> : vector<16x8xf32>
    %2 = tpu.matmul %0, %1, %cst {dimension_numbers = #tpu.dot_dimension_numbers<[1], [1], [0], [0], [0, 0, 1, 0], [], []>} : vector<16x32xf32>, vector<8x32xf32>, vector<16x8xf32> -> vector<16x8xf32>
    %c0_3 = arith.constant 0 : index
    %c0_4 = arith.constant 0 : index
    %3 = vector.load %arg3[%c0_3, %c0_4] : memref<8x32xf32, #tpu.memory_space<vmem>>, vector<8x32xf32>
    %cst_5 = arith.constant dense<0.000000e+00> : vector<16x32xf32>
    %4 = tpu.matmul %2, %3, %cst_5 {dimension_numbers = #tpu.dot_dimension_numbers<[1], [0], [0], [1], [0, 0, 1, 1], [], []>} : vector<16x8xf32>, vector<8x32xf32>, vector<16x32xf32> -> vector<16x32xf32>
    %c0_6 = arith.constant 0 : index
    %c0_7 = arith.constant 0 : index
    %5 = vector.load %arg1[%c0_6, %c0_7] : memref<16x32xf32, #tpu.memory_space<vmem>>, vector<16x32xf32>
    %6 = arith.subf %5, %4 : vector<16x32xf32>
    %c0_8 = arith.constant 0 : index
    %c0_9 = arith.constant 0 : index
    %7 = vector.load %arg4[%c0_8, %c0_9] : memref<16x32xf32, #tpu.memory_space<vmem>>, vector<16x32xf32>
    tpu.vector_store %arg4[%c0_8, %c0_9], %6 {strides = array<i32>} : memref<16x32xf32, #tpu.memory_space<vmem>>, vector<16x32xf32>,
    return
  }
  func.func @transform_0(%arg0: i32) -> (i32, i32) {
    %c0_i32 = arith.constant 0 : i32
    %c0_i32_0 = arith.constant 0 : i32
    return %arg0, %c0_i32 : i32, i32
  }
  func.func @transform_1(%arg0: i32) -> (i32, i32) {
    %c0_i32 = arith.constant 0 : i32
    %c0_i32_0 = arith.constant 0 : i32
    %c0_i32_1 = arith.constant 0 : i32
    return %c0_i32, %c0_i32_0 : i32, i32
  }
  func.func @transform_2(%arg0: i32) -> (i32, i32) {
    %c0_i32 = arith.constant 0 : i32
    %c0_i32_0 = arith.constant 0 : i32
    %c0_i32_1 = arith.constant 0 : i32
    return %c0_i32, %c0_i32_0 : i32, i32
  }
  func.func @transform_3(%arg0: i32) -> (i32, i32) {
    %c0_i32 = arith.constant 0 : i32
    %c0_i32_0 = arith.constant 0 : i32
    return %arg0, %c0_i32 : i32, i32
  }
}

</mosaic_0001>

<bundles_post_ra>
// kernel: tpu_custom_call.1
= control target key start
LH: loop header
LB: loop body
LE: loop exit
PB: predicated region body
PF: predicated region fallthrough
CT: control target
= control target key end

     0   :  { %8 = vsyncpa [#allocation3], 0  ;;  %s1032_s0 = inlined_call_operand.hbm [shape: f32[32,32], index: 0, kind: input, shape index: {}]   ;;  %s1033_s1 = inlined_call_operand.hbm [shape: f32[8,32], index: 1, kind: input, shape index: {}]   ;;  %s1034_s2 = inlined_call_operand.hbm [shape: f32[8,32], index: 2, kind: input, shape index: {}]   ;;  %s1035_s3 = inlined_call_operand.hbm [shape: f32[32,32], index: 3, kind: output, shape index: {}]  }
   0x1   :  { %10 = vsyncpa [#allocation3 + $0x1], 0 }
   0x2   :  { %11 = vsyncpa [#allocation6], 0 }
   0x3   :  { %12 = vsyncpa [#allocation4], 0 }
   0x4   :  { %14 = vsyncpa [#allocation4 + $0x1], 0  ;;  %s795_s12 = smov 0   ;;  %s797_s13 = smov 0  }
   0x5   :  { %s799_s14 = smov 0   ;;  %s801_s15 = smov 0  }
   0x6 LB: > { %s816_s16 = sadd.s32 4294967295, %s765_s15   ;;  %s497_s17 = sadd.s32 4294967294, %s765_s15   ;;  %s765_s15 = sphi %s801_s15, %s1060_s15   ;;  %s761_s14 = sphi %s799_s14, %s1059_s14   ;;  %s757_s13 = sphi %s797_s13, %s1058_s13   ;;  %s753_s12 = sphi %s795_s12, %s1057_s12  }
   0x7   : > { %s820_s18 = sadd.s32 1, %s765_s15   ;;  %s27_s19 = sadd.s32 1, %s761_s14 }
   0x8   : > { %s24_s20 = ssub.s32 %s765_s15, %s820_s18  ;;  %p34_p0 = scmp.ne.s32.totalorder %s761_s14, %s757_s13 }
   0x9   : > { %p25_p1 = scmp.eq.s32.totalorder %s24_s20, 0  ;;  %p35_p2 = scmp.eq.s32.totalorder %s765_s15, 0 }
   0xa   : > { %p40_p3 = scmp.ne.s32.totalorder %s757_s13, %s753_s12  ;;  %p1036_p4 = scmp.eq.s32.totalorder %s816_s16, 0 }
   0xb   : > { %s832_s21 = scalar_select %p25_p1, %s761_s14, %s27_s19  }
   0xc   : > { %p834_p5 = por %p35_p2, %p34_p0  ;;  %p840_p6 = por %p1036_p4, %p40_p3 }
   0xd   : > { %p106_p7 = scmp.eq.s32.totalorder %s816_s16, 1  ;;  %p112_p8 = scmp.eq.s32.totalorder %s497_s17, 1 }
   0xe   : > { %s1042_s23 = scalar_select %p840_p6, 1, 0 }
   0xf   : > { %p498_p9 = scmp.ge.s32.totalorder %s765_s15, 1  ;;  %p119_p10 = scmp.lt.s32.totalorder %s765_s15, 3 }
  0x10   : > { %p847_p11 = por %p106_p7, %p34_p0  ;;  %p851_p12 = por %p112_p8, %p40_p3 }
  0x11   : > { %p855_p13 = pnand %p498_p9, %p119_p10  ;;  %s767_s27 = smov [#allocation5]  }
  0x12   : > { %s1043_s24 = scalar_select %p847_p11, 1, 0 }
  0x13   : > { %s1044_s25 = scalar_select %p851_p12, 1, 0 }
  0x14   : > { %s1045_s26 = scalar_select %p855_p13, 1, 0 }
  0x15   : > { %p550_p2 = pneg %p855_p13  ;;  %s132_s28 = sshll.u32 %s767_s27, 4  ;;  %s133_s28 = int_to_ptr.vmem [resolvable:$true] %s132_s28 }
  0x16   : > { %p567_p4 = scmp.lt.s32.totalorder %s765_s15, 2  ;;  %p1046_p0 = scmp.eq.s32.totalorder %s816_s16, 0 }
  0x17   : > { %s768_s4 = smov [#allocation7]   ;;  %s609_s8 = scalar_lea.hbm %s1033_s1, 128 }
  0x18   : > { %p865_p7 = pnand %p550_p2, %p1046_p0  ;;  %p871_p3 = pnand %p567_p4, %p834_p5 }
  0x19   : > { %s143_s5 = sshll.u32 %s768_s4, 4  ;;  %p610_p8 = scmp.ne.s32.totalorder %s1033_s1, %s609_s8  ;;  %s875_s5 = int_to_ptr.vmem [resolvable:$true] %s143_s5 }
  0x1a   : > { %s1048_s30 = scalar_select %p871_p3, 1, 0 }
  0x1b   : > { %p611_p9 = pneg %p865_p7  ;;  %p616_p10 = scmp.lt.u32.totalorder %s609_s8, %s1033_s1 }
  0x1d   : > { %p612_p4 = pnand %p611_p9, %p610_p8 }
  0x1f   : > { %p613_p5 = pneg %p612_p4 }
  0x21   : > { %p618_p2 = pnand %p616_p10, %p613_p5 }
  0x23   : > { %621 = shalt.err (!%p618_p2)
}
  0x24   : > { %s622_s19 = scalar_lea.vmem %s133_s28, 128  ;;  %p630_p11 = scmp.lt.s32.totalorder %s133_s28, %s133_s28 }
  0x25   : > { %p623_p0 = scmp.ne.s32.totalorder %s133_s28, %s622_s19  ;;  %p631_p6 = scmp.lt.s32.totalorder %s622_s19, %s622_s19 }
  0x27   : > { %p625_p1 = pnand %p623_p0, %p611_p9  ;;  %p632_p13 = por %p631_p6, %p630_p11 }
  0x29   : > { %p626_p12 = pneg %p625_p1 }
  0x2b   : > { %p633_p3 = pnand %p632_p13, %p626_p12 }
  0x2d   : > { %636 = shalt.err (!%p633_p3)
}
  0x2e   : > { %553 = dma.hbm_to_vmem [thread:$0]  (!%p865_p7), %s1033_s1, 128, %s133_s28, [#allocation6]  }
  0x2f   : > { %s154_s27 = sand.u32 1, %s761_s14   ;;  %s637_s7 = scalar_lea.hbm %s1034_s2, 128 }
  0x30   : > { %p638_p1 = scmp.ne.s32.totalorder %s1034_s2, %s637_s7  ;;  %p644_p12 = scmp.lt.u32.totalorder %s637_s7, %s1034_s2 }
  0x32   : > { %p640_p6 = pnand %p638_p1, %p611_p9 }
  0x34   : > { %p641_p11 = pneg %p640_p6 }
  0x36   : > { %p646_p13 = pnand %p644_p12, %p641_p11 }
  0x38   : > { %649 = shalt.err (!%p646_p13)
}
  0x39   : > { %s650_s28 = scalar_lea.vmem %s875_s5, 128  ;;  %p658_p5 = scmp.lt.s32.totalorder %s875_s5, %s875_s5 }
  0x3a   : > { %p651_p3 = scmp.ne.s32.totalorder %s875_s5, %s650_s28  ;;  %p659_p10 = scmp.lt.s32.totalorder %s650_s28, %s650_s28 }
  0x3c   : > { %p653_p8 = pnand %p651_p3, %p611_p9  ;;  %p660_p2 = por %p659_p10, %p658_p5 }
  0x3e   : > { %p654_p4 = pneg %p653_p8 }
  0x40   : > { %p661_p0 = pnand %p660_p2, %p654_p4 }
  0x42   : > { %664 = shalt.err (!%p661_p0)
}
  0x43   : > { %556 = dma.hbm_to_vmem [thread:$0]  (!%p865_p7), %s1034_s2, 128, %s875_s5, [#allocation6]  }
  0x44   : > { %s502_s20 = sshll.u32 %s154_s27, 4  ;;  %s520_s22 = sshll.u32 %s765_s15, 8 }
  0x45   : > { %s929_s7 = scalar_lea.hbm %s1032_s0, %s520_s22  ;;  %s158_s29 = scalar_lea.vmem [#allocation2], %s502_s20 }
  0x46   : > { %s165_s8 = sshll.u32 %s158_s29, 4  ;;  %s933_s9 = scalar_lea.sflag [#allocation3], %s154_s27  ;;  %s931_s8 = int_to_ptr.vmem [resolvable:$true] %s165_s8 }
  0x47   : > { %s665_s10 = scalar_lea.hbm %s929_s7, 256  ;;  %p1049_p7 = scmp.ne.s32.totalorder %s1048_s30, 0 }
  0x48   : > { %p666_p9 = scmp.ne.s32.totalorder %s929_s7, %s665_s10  ;;  %s670_s28 = scalar_lea.hbm %s1032_s0, 512 }
  0x49   : > { %p667_p1 = pneg %p1049_p7  ;;  %p671_p12 = scmp.lt.u32.totalorder %s929_s7, %s1032_s0 }
  0x4a   : > { %p672_p13 = scmp.lt.u32.totalorder %s670_s28, %s665_s10  ;;  %p674_p8 = scmp.lt.u32.totalorder %s665_s10, %s929_s7 }
  0x4b   : > { %p668_p6 = pnand %p667_p1, %p666_p9 }
  0x4c   : > { %p673_p3 = por %p672_p13, %p671_p12 }
  0x4d   : > { %p669_p11 = pneg %p668_p6 }
  0x4e   : > { %p675_p4 = por %p674_p8, %p673_p3 }
  0x50   : > { %p676_p5 = pnand %p675_p4, %p669_p11 }
  0x52   : > { %679 = shalt.err (!%p676_p5)
}
  0x53   : > { %s680_s27 = scalar_lea.vmem %s931_s8, 256  ;;  %s769_s20 = smov [#allocation2]  }
  0x54   : > { %p681_p10 = scmp.ne.s32.totalorder %s931_s8, %s680_s27  ;;  %s685_s22 = sshll.u32 %s769_s20, 4  ;;  %s686_s22 = int_to_ptr.vmem [resolvable:$false] %s685_s22 }
  0x55   : > { %s687_s4 = scalar_lea.vmem %s686_s22, 512  ;;  %p688_p9 = scmp.lt.s32.totalorder %s931_s8, %s686_s22 }
  0x56   : > { %p683_p2 = pnand %p681_p10, %p667_p1  ;;  %p689_p6 = scmp.lt.s32.totalorder %s687_s4, %s680_s27 }
  0x58   : > { %p684_p0 = pneg %p683_p2  ;;  %p690_p12 = por %p689_p6, %p688_p9 }
  0x5a   : > { %p691_p13 = pnand %p690_p12, %p684_p0 }
  0x5c   : > { %694 = shalt.err (!%p691_p13)
}
  0x5d   : > { %s770_s6 = smov 128   ;;  %s771_s29 = smov 8  }
  0x5e   : > { %560 = dma.hbm_to_vmem [thread:$0]  (!%p1049_p7), %s929_s7, 256, %s931_s8, %s933_s9, %s770_s6, %s770_s6, %s771_s29  }
  0x5f   : > { %p1050_p1 = scmp.ne.s32.totalorder %s1045_s26, 0 }
  0x60   : > { %s964_s10 = sand.u32 (!%p1050_p1), 1, %s757_s13   ;;  %p1051_p11 = scmp.ne.s32.totalorder (!%p1050_p1), %s1042_s23, 0 }
  0x61   : > { %177 = sbr.rel (%p1050_p1) target bundleno = 557 (0x22d), region = 32  ;;  %s506_s5 = sshll.u32 (!%p1050_p1), %s964_s10, 4 }
  0x62   : > { %s180_s11 = scalar_lea.sflag (!%p1050_p1), [#allocation3], %s964_s10  ;;  %s183_s28 = scalar_lea.vmem (!%p1050_p1), [#allocation2], %s506_s5 }
  0x68   : > { %740 = dma.done.wait (%p1051_p11), %s180_s11, 256  }
  0x69   : > { %742 = vsyncadd (%p1051_p11), %s180_s11, 4294967040  ;;  %p1052_p3 = scmp.eq.s32.totalorder %s816_s16, 0 }
  0x6b   : > { %744 = dma.done.wait (%p1052_p3), [#allocation6], 256   ;;  %p1053_p7 = pmov %p1052_p3 }
  0x6c   : > { %vm219_vm0 = vcmask 261120   ;;  %v218_v0 = vld [vmem:[#allocation5] sm:$0xff]  ;;  %v217_v2 = vld [vmem:[%s183_s28 + $0x8] sm:$0xff]  ;;  %vm305_vm1 = vcmask 64512   ;;  %s213_s23 = scalar_lea.vmem [#allocation8], %s506_s5  ;;  %s521_s30 = sshll.u32 %s816_s16, 8 }
  0x6d   : > { %746 = vsyncadd (%p1053_p7), [#allocation6], 4294967040  ;;  %v216_v1 = vld [vmem:[%s183_s28] sm:$0xff]  ;;  %528 = vmatprep.subr.msk.mxu0 %vm219_vm0, %v218_v0  ;;  %v304_v3 = vld [vmem:[#allocation7] sm:$0xff]  ;;  %s405_s26 = sshll.u32 %s213_s23, 4  ;;  %s986_s9 = scalar_lea.hbm %s1035_s3, %s521_s30  ;;  %s981_s26 = int_to_ptr.vmem [resolvable:$true] %s405_s26 }
  0x6e   : > { %530 = vmatprep.mubr.msk.f32.mxu0 %vm219_vm0, %v216_v1  ;;  %529 = vmatpush3.xpose.msk.msra.mxu0 %vm219_vm0, %v218_v0  ;;  %s392_s17 = scalar_lea.sflag [#allocation4], %s964_s10  ;;  %s695_s16 = scalar_lea.vmem %s981_s26, 256 }
  0x6f   : > { %533 = vmatprep.subr.mxu1 %v304_v3  ;;  %p696_p8 = scmp.ne.s32.totalorder %s981_s26, %s695_s16  ;;  %p1054_p4 = scmp.ne.s32.totalorder %s1043_s24, 0 }
  0x70   : > { %534 = vmatpush3.msra.mxu1 %v304_v3  ;;  %s772_s19 = smov [#allocation8]  }
  0x71   : > { %531 = vmatmul.mubr.msk.f32.vlgmr.msra.gmra.mrb[0].mxu0 %vm219_vm0, %v217_v2  ;;  %p697_p5 = pnand %p696_p8, %p1054_p4  ;;  %s699_s27 = sshll.u32 %s772_s19, 4  ;;  %s700_s27 = int_to_ptr.vmem [resolvable:$false] %s699_s27 }
  0x72   : > { %s701_s20 = scalar_lea.vmem %s700_s27, 512  ;;  %p702_p2 = scmp.lt.s32.totalorder %s981_s26, %s700_s27 }
  0x73   : > { %p698_p10 = pneg %p697_p5  ;;  %p703_p0 = scmp.lt.s32.totalorder %s701_s20, %s695_s16 }
  0x75   : > { %p704_p9 = por %p703_p0, %p702_p2 }
  0x77   : > { %p705_p6 = pnand %p704_p9, %p698_p10 }
 0x144   : > { %v532_v4 = vpop.f32.mrb[0].mxu0 }
 0x145   : > { %v295_v5 = vpop.f32.mrb[1].mxu0 }
 0x146   : > { %535 = vmatprep.mubr.msk.f32.mxu1 %vm305_vm1, %v295_v5 }
 0x147   : > { %536 = vmatmul.mubr.msk.f32.vlgmr.msra.gmra.mrb[0].mxu1 %vm305_vm1, %v532_v4 }
 0x21a   : > { %v537_v6 = vpop.f32.mrb[0].mxu1 }
 0x21b   : > { %v388_v7 = vsub.f32 %v217_v2, %v537_v6  ;;  %v378_v8 = vpop.f32.mrb[1].mxu1 }
 0x21c   : > { %v387_v9 = vsub.f32 %v216_v1, %v378_v8 }
 0x21d   : > { %390 = vst.msk [vmem:[%s213_s23 + $0x8] sm:$0xff] %vm219_vm0, %v388_v7 }
 0x21e   : > { %389 = vst.msk [vmem:[%s213_s23] sm:$0xff] %vm219_vm0, %v387_v9 }
 0x21f   : > { %708 = shalt.err (!%p705_p6)
}
 0x220   : > { %s709_s22 = scalar_lea.hbm %s986_s9, 256  ;;  %s713_s29 = scalar_lea.hbm %s1035_s3, 512 }
 0x221   : > { %p710_p12 = scmp.ne.s32.totalorder %s986_s9, %s709_s22  ;;  %p714_p11 = scmp.lt.u32.totalorder %s986_s9, %s1035_s3 }
 0x222   : > { %p715_p3 = scmp.lt.u32.totalorder %s713_s29, %s709_s22  ;;  %p717_p8 = scmp.lt.u32.totalorder %s709_s22, %s986_s9 }
 0x223   : > { %p711_p13 = pnand %p710_p12, %p1054_p4 }
 0x224   : > { %p716_p7 = por %p715_p3, %p714_p11 }
 0x225   : > { %p712_p1 = pneg %p711_p13 }
 0x226   : > { %p718_p5 = por %p717_p8, %p716_p7 }
 0x228   : > { %p719_p10 = pnand %p718_p5, %p712_p1 }
 0x22a   : > { %722 = shalt.err (!%p719_p10)
}
 0x22b   : > { %s773_s28 = smov 128   ;;  %s774_s23 = smov 8  }
 0x22c   : > { %548 = dma.vmem_to_hbm [thread:$0]  (%p1054_p4), %s981_s26, 256, %s986_s9, %s392_s17, %s773_s28, %s773_s28, %s774_s23  }
 0x22d PF: > { %s420_s30 = sand.u32 1, %s753_s12   ;;  %p1055_p2 = scmp.ne.s32.totalorder %s1044_s25, 0 }
 0x22e   : > { %p1056_p0 = scmp.ge.s32.totalorder %s765_s15, 2  ;;  %s421_s7 = scalar_lea.sflag [#allocation4], %s420_s30 }
 0x230   : > { %p562_p9 = pnand %p1056_p0, %p1055_p2 }
 0x232   : > { %748 = dma.done.wait (!%p562_p9), %s421_s7, 256  }
 0x233   : > { %750 = vsyncadd (!%p562_p9), %s421_s7, 4294967040  ;;  %p17_p6 = scmp.ge.s32.totalorder %s820_s18, 4   ;;  %s1057_s12 = smov %s757_s13 }
 0x234   : > { %s1058_s13 = smov %s761_s14  ;;  %s1059_s14 = smov %s832_s21 }
 0x235   : > { %s1060_s15 = smov %s820_s18  ;;  %19 = sbr.rel (!%p17_p6) target bundleno = 6 (0x6), region = 85 }
 0x23c   :  { %426 = vsyncpa [#allocation3], 1 }
 0x23d   :  { %428 = vsyncpa [#allocation3 + $0x1], 1 }
 0x23e   :  { %429 = vsyncpa [#allocation6], 1 }
 0x23f   :  { %430 = vsyncpa [#allocation4], 1 }
 0x240   :  { %432 = vsyncpa [#allocation4 + $0x1], 1 }

</bundles_post_ra>
